<compile_context>
chip_gen: v5e
topology: v5e:2x2
jax: 0.10.0
libtpu: 0.0.40
codegen_flags: <defaults>
</compile_context>

<pallas_src>
import functools
import math

import numpy as np
import jax
import jax.numpy as jnp
from jax.experimental import pallas as pl
from jax.experimental.pallas import tpu as pltpu


# ----------------------------- Pallas GEMM ----------------------------------

def _round_up(v, m):
    return (v + m - 1) // m * m


def _matmul_bias_kernel(a_ref, b_ref, bias_ref, o_ref):
    # a_ref: (TM, Kg) bf16, b_ref: (Kg, cog) bf16, bias_ref: (1, cog) f32
    acc = jnp.dot(a_ref[...], b_ref[...], preferred_element_type=jnp.float32)
    o_ref[...] = acc + bias_ref[...]


def _grouped_matmul_bias(A, B, bias, tm=512):
    """A: (G, M, K) bf16, B: (G, K, Ncols) bf16, bias: (G, 1, Ncols) f32
    -> (G, M, Ncols) f32, computed on the MXU with f32 accumulation."""
    G, M, K = A.shape
    _, _, Ncols = B.shape

    Mp = _round_up(M, 8)
    if Mp != M:                      # rare: at most 7 rows, fuses under jit
        A = jnp.pad(A, ((0, 0), (0, Mp - M), (0, 0)))
    TM = min(tm, Mp)                 # v7x note: TM=512 keeps VMEM well inside
    grid = (G, pl.cdiv(Mp, TM))      # the 32 MiB default scoped limit.

    out = pl.pallas_call(
        _matmul_bias_kernel,
        out_shape=jax.ShapeDtypeStruct((G, Mp, Ncols), jnp.float32),
        grid=grid,
        in_specs=[
            # A tile: group g, M-block i, full K extent (no K padding copy).
            pl.BlockSpec((None, TM, K), lambda g, i: (g, i, 0)),
            # B: the group's full weight slab, resident across the M loop.
            pl.BlockSpec((None, K, Ncols), lambda g, i: (g, 0, 0)),
            # bias: tiny per-group row, added in the epilogue.
            pl.BlockSpec((None, 1, Ncols), lambda g, i: (g, 0, 0)),
        ],
        out_specs=pl.BlockSpec((None, TM, Ncols), lambda g, i: (g, i, 0)),
        compiler_params=pltpu.CompilerParams(
            dimension_semantics=("parallel", "parallel")),
    )(A, B, bias)
    return out[:, :M] if Mp != M else out


# ----------------------- deformable im2col (NHWC) ---------------------------

def _modulated_deform_im2col_nhwc(x_nhwc, offset, mask, Kh, Kw,
                                  stride, padding, dilation, deformable_groups):
    """Lane-dense modulated deformable im2col.

    Returns col: (N, Ho, Wo, Kh*Kw, C) f32 (channel last = 128-lane axis).
    """
    # TODO(synk): the data-dependent bilinear gather stays in plain JAX (no
    # clean TPU Pallas dynamic-gather primitive); the GEMM is the Pallas path.
    N, H, W, C = x_nhwc.shape
    sh, sw = stride
    ph, pw = padding
    dh, dw = dilation
    Ho = (H + 2 * ph - (dh * (Kh - 1) + 1)) // sh + 1
    Wo = (W + 2 * pw - (dw * (Kw - 1) + 1)) // sw + 1
    dg = deformable_groups
    cpg = C // dg
    Kk = Kh * Kw
    P = Ho * Wo * Kk

    # offset layout per deformable group: channel 2k = dy, 2k+1 = dx (k=i*Kw+j)
    off = offset.reshape(N, dg, Kk, 2, Ho, Wo)
    dy = jnp.transpose(off[:, :, :, 0], (0, 1, 3, 4, 2))      # (N,dg,Ho,Wo,Kk)
    dx = jnp.transpose(off[:, :, :, 1], (0, 1, 3, 4, 2))
    m = jnp.transpose(mask.reshape(N, dg, Kk, Ho, Wo), (0, 1, 3, 4, 2))

    ho = jnp.arange(Ho, dtype=jnp.float32)
    wo = jnp.arange(Wo, dtype=jnp.float32)
    ki = jnp.arange(Kh, dtype=jnp.float32)
    kj = jnp.arange(Kw, dtype=jnp.float32)
    base_y = (ho[:, None, None, None] * sh - ph) + ki[None, None, :, None] * dh
    base_x = (wo[None, :, None, None] * sw - pw) + kj[None, None, None, :] * dw
    base_y = jnp.broadcast_to(base_y, (Ho, Wo, Kh, Kw)).reshape(Ho, Wo, Kk)
    base_x = jnp.broadcast_to(base_x, (Ho, Wo, Kh, Kw)).reshape(Ho, Wo, Kk)

    y = base_y[None, None] + dy                                # (N,dg,Ho,Wo,Kk)
    x = base_x[None, None] + dx

    # bilinear weights / corner indices (all f32 / int32)
    outside = (y <= -1.0) | (y >= H) | (x <= -1.0) | (x >= W)
    h0 = jnp.floor(y)
    w0 = jnp.floor(x)
    lh = y - h0
    lw = x - w0
    hh = 1.0 - lh
    hw = 1.0 - lw
    h0i = h0.astype(jnp.int32)
    w0i = w0.astype(jnp.int32)
    h1i = h0i + 1
    w1i = w0i + 1

    flat_x = x_nhwc.reshape(N, H * W, dg, cpg)
    batch_idx = jnp.arange(N, dtype=jnp.int32)[:, None]        # (N,1)

    cols = []
    for d in range(dg):
        xd = flat_x[:, :, d]                                   # (N, H*W, cpg)

        def corner(hi, wi):
            valid = (hi >= 0) & (hi < H) & (wi >= 0) & (wi < W)
            hc = jnp.clip(hi, 0, H - 1)
            wc = jnp.clip(wi, 0, W - 1)
            idx = (hc * W + wc).reshape(N, P)
            v = xd[batch_idx, idx]                             # (N, P, cpg)
            return jnp.where(valid.reshape(N, P, 1), v, 0.0)

        v1 = corner(h0i[:, d], w0i[:, d])
        v2 = corner(h0i[:, d], w1i[:, d])
        v3 = corner(h1i[:, d], w0i[:, d])
        v4 = corner(h1i[:, d], w1i[:, d])
        w1 = (hh[:, d] * hw[:, d]).reshape(N, P, 1)
        w2 = (hh[:, d] * lw[:, d]).reshape(N, P, 1)
        w3 = (lh[:, d] * hw[:, d]).reshape(N, P, 1)
        w4 = (lh[:, d] * lw[:, d]).reshape(N, P, 1)
        val = w1 * v1 + w2 * v2 + w3 * v3 + w4 * v4
        val = jnp.where(outside[:, d].reshape(N, P, 1), 0.0, val)
        val = val * m[:, d].reshape(N, P, 1)                   # modulation
        cols.append(val.reshape(N, Ho, Wo, Kk, cpg))

    col = cols[0] if dg == 1 else jnp.concatenate(cols, axis=-1)
    return col, Ho, Wo


# ------------------------------ forward --------------------------------------

@functools.partial(jax.jit, static_argnames=(
    "stride", "padding", "dilation", "groups", "deformable_groups"))
def modulated_deform_conv(x, offset, mask, weight, bias, *, stride=1,
                          padding=0, dilation=1, groups=1, deformable_groups=1):
    """ModulatedDeformConvFunction.forward (DCNv2) — NCHW in / NCHW out."""
    N, C, H, W = x.shape
    C_out, cig, Kh, Kw = weight.shape
    G = groups
    cog = C_out // G
    Kk = Kh * Kw
    Kg = Kk * cig

    # Single layout transform at the module boundary; everything inside is NHWC.
    x_nhwc = jnp.transpose(x, (0, 2, 3, 1)).astype(jnp.float32)
    col, Ho, Wo = _modulated_deform_im2col_nhwc(
        x_nhwc, offset.astype(jnp.float32), mask.astype(jnp.float32),
        Kh, Kw, (stride, stride), (padding, padding), (dilation, dilation),
        deformable_groups)
    M = N * Ho * Wo

    # Columns -> (G, M, Kg). Pure reshape for groups == 1 (the common case).
    if G == 1:
        A = col.reshape(1, M, Kg)
    else:
        A = (col.reshape(N, Ho, Wo, Kk, G, cig)
                .transpose(4, 0, 1, 2, 3, 5)
                .reshape(G, M, Kg))
    A = A.astype(jnp.bfloat16)      # bf16 at the MXU boundary only

    # Weight -> (G, Kg, cog) with K ordered (k, c) to match A's K axis.
    B = (weight.reshape(G, cog, cig, Kk)
               .transpose(0, 3, 2, 1)
               .reshape(G, Kg, cog)
               .astype(jnp.bfloat16))
    bias3 = bias.reshape(G, 1, cog).astype(jnp.float32)

    out = _grouped_matmul_bias(A, B, bias3)                    # (G, M, cog) f32
    out = (out.reshape(G, N, Ho, Wo, cog)
              .transpose(1, 0, 4, 2, 3)
              .reshape(N, C_out, Ho, Wo))
    return out.astype(x.dtype)


# ------------------------------ module ---------------------------------------

def _pair(v):
    return (v, v) if isinstance(v, int) else tuple(v)


class ModulatedDeformConvPallas:
    """JAX/Pallas port of ModulatedDeformConv (forward only)."""

    def __init__(self, in_channels, out_channels, kernel_size, stride=1,
                 padding=0, dilation=1, groups=1, deformable_groups=1,
                 bias=True, key=None):
        self.in_channels = in_channels
        self.out_channels = out_channels
        self.kernel_size = _pair(kernel_size)
        self.stride = stride
        self.padding = padding
        self.dilation = dilation
        self.groups = groups
        self.deformable_groups = deformable_groups
        self.with_bias = bias
        Kh, Kw = self.kernel_size

        if key is None:
            key = jax.random.PRNGKey(0)
        # reset_parameters(): weight ~ U(-stdv, stdv), bias zeroed.
        n = in_channels * Kh * Kw
        stdv = 1.0 / math.sqrt(n)
        self.weight = jax.random.uniform(
            key, (out_channels, in_channels // groups, Kh, Kw),
            jnp.float32, -stdv, stdv)
        self.bias = jnp.zeros((out_channels,), jnp.float32) if bias else None

    def __call__(self, x, offset, mask):
        b = self.bias if self.bias is not None else jnp.zeros(
            (self.out_channels,), jnp.float32)
        return modulated_deform_conv(
            x, offset, mask, self.weight, b, stride=self.stride,
            padding=self.padding, dilation=self.dilation, groups=self.groups,
            deformable_groups=self.deformable_groups)


# --------------------------- pure-JAX reference ------------------------------

def _bilinear_gather_nchw(img, y, x):
    """Independent NCHW reference sampler (zero outside, per DCN CUDA)."""
    N, C, H, W = img.shape
    outside = (y <= -1.0) | (y >= H) | (x <= -1.0) | (x >= W)
    h0 = jnp.floor(y)
    w0 = jnp.floor(x)
    lh = y - h0
    lw = x - w0
    hh = 1.0 - lh
    hw = 1.0 - lw
    h0i = h0.astype(jnp.int32)
    w0i = w0.astype(jnp.int32)
    h1i = h0i + 1
    w1i = w0i + 1
    flat = img.reshape(N, C, H * W)

    def corner(hi, wi):
        valid = (hi >= 0) & (hi < H) & (wi >= 0) & (wi < W)
        hc = jnp.clip(hi, 0, H - 1)
        wc = jnp.clip(wi, 0, W - 1)
        idx = (hc * W + wc).reshape(N, C, -1)
        v = jnp.take_along_axis(flat, idx, axis=2).reshape(hi.shape)
        return jnp.where(valid, v, 0.0)

    v1 = corner(h0i, w0i)
    v2 = corner(h0i, w1i)
    v3 = corner(h1i, w0i)
    v4 = corner(h1i, w1i)
    val = hh * hw * v1 + hh * lw * v2 + lh * hw * v3 + lh * lw * v4
    return jnp.where(outside, 0.0, val)


def reference_modulated_deform_conv(x, offset, mask, weight, bias, stride,
                                    padding, dilation, groups,
                                    deformable_groups):
    """Plain-JAX f32 reference (NCHW, channel-replicated coordinates)."""
    N, C, H, W = x.shape
    C_out, cig, Kh, Kw = weight.shape
    sh = sw = stride
    ph = pw = padding
    dh = dw = dilation
    Ho = (H + 2 * ph - (dh * (Kh - 1) + 1)) // sh + 1
    Wo = (W + 2 * pw - (dw * (Kw - 1) + 1)) // sw + 1
    dg = deformable_groups

    off = offset.reshape(N, dg, Kh * Kw, 2, Ho, Wo)
    dy = off[:, :, :, 0].reshape(N, dg, Kh, Kw, Ho, Wo)
    dx = off[:, :, :, 1].reshape(N, dg, Kh, Kw, Ho, Wo)
    m = mask.reshape(N, dg, Kh, Kw, Ho, Wo)

    ho = jnp.arange(Ho, dtype=jnp.float32)
    wo = jnp.arange(Wo, dtype=jnp.float32)
    ki = jnp.arange(Kh, dtype=jnp.float32)
    kj = jnp.arange(Kw, dtype=jnp.float32)
    base_y = (ho[None, None, :, None] * sh - ph) + ki[:, None, None, None] * dh
    base_x = (wo[None, None, None, :] * sw - pw) + kj[None, :, None, None] * dw
    base_y = jnp.broadcast_to(base_y, (Kh, Kw, Ho, Wo))
    base_x = jnp.broadcast_to(base_x, (Kh, Kw, Ho, Wo))

    y = base_y[None, None] + dy
    xx = base_x[None, None] + dx
    cpg = C // dg
    y = jnp.repeat(y, cpg, axis=1)
    xx = jnp.repeat(xx, cpg, axis=1)
    mm = jnp.repeat(m, cpg, axis=1)

    col = _bilinear_gather_nchw(x, y, xx) * mm        # (N, C, Kh, Kw, Ho, Wo)

    cog = C_out // groups
    outs = []
    for g in range(groups):
        col_g = col[:, g * cig:(g + 1) * cig].reshape(N, cig * Kh * Kw, Ho * Wo)
        w_g = weight[g * cog:(g + 1) * cog].reshape(cog, cig * Kh * Kw)
        outs.append(jnp.einsum('ok,nkp->nop', w_g, col_g))
    out = jnp.concatenate(outs, axis=1).reshape(N, C_out, Ho, Wo)
    return out + bias[None, :, None, None]


# ----------------------------- demo / check ----------------------------------

if __name__ == "__main__":
    key = jax.random.PRNGKey(0)
    ks = jax.random.split(key, 10)
    TOL = dict(atol=2e-2, rtol=2e-2)   # absorbs bf16 MXU rounding vs f32 ref

    # ---- config 1: groups=1, deformable_groups=1, non-trivial offsets/mask --
    in_ch, out_ch, ksz = 4, 4, 3
    mod = ModulatedDeformConvPallas(in_ch, out_ch, ksz, stride=1, padding=1,
                                    dilation=1, groups=1, deformable_groups=1,
                                    bias=True, key=ks[0])
    mod.bias = 0.1 * jax.random.normal(ks[1], (out_ch,), jnp.float32)

    N, H, W = 2, 16, 16
    Kh, Kw = mod.kernel_size
    Ho = Wo = 16
    x = jax.random.normal(ks[2], (N, in_ch, H, W), jnp.float32)
    offset = 1.5 * jax.random.normal(ks[3], (N, 2 * Kh * Kw, Ho, Wo), jnp.float32)
    mask = jax.nn.sigmoid(jax.random.normal(ks[4], (N, Kh * Kw, Ho, Wo), jnp.float32))

    out = jax.block_until_ready(mod(x, offset, mask))
    ref = reference_modulated_deform_conv(x, offset, mask, mod.weight, mod.bias,
                                          1, 1, 1, 1, 1)
    assert out.shape == (N, out_ch, Ho, Wo), out.shape
    assert np.allclose(np.asarray(out), np.asarray(ref), **TOL)

    # zero offsets + unit mask must reduce to a plain conv (+bias)
    out0 = jax.block_until_ready(
        mod(x, jnp.zeros_like(offset), jnp.ones_like(mask)))
    ref0 = jax.lax.conv_general_dilated(
        x, mod.weight, window_strides=(1, 1), padding=[(1, 1), (1, 1)],
        rhs_dilation=(1, 1), dimension_numbers=("NCHW", "OIHW", "NCHW"),
        feature_group_count=1) + mod.bias[None, :, None, None]
    assert np.allclose(np.asarray(out0), np.asarray(ref0), **TOL)

    # ---- config 2: groups=2, deformable_groups=2, dilation=2 ----------------
    in2, out2 = 8, 8
    mod2 = ModulatedDeformConvPallas(in2, out2, 3, stride=1, padding=2,
                                     dilation=2, groups=2, deformable_groups=2,
                                     bias=True, key=ks[5])
    mod2.bias = 0.1 * jax.random.normal(ks[6], (out2,), jnp.float32)
    N2, H2, W2 = 1, 8, 8
    Ho2 = Wo2 = 8
    x2 = jax.random.normal(ks[7], (N2, in2, H2, W2), jnp.float32)
    off2 = 1.5 * jax.random.normal(ks[8], (N2, 2 * 2 * 9, Ho2, Wo2), jnp.float32)
    msk2 = jax.nn.sigmoid(jax.random.normal(ks[9], (N2, 2 * 9, Ho2, Wo2), jnp.float32))

    out2_v = jax.block_until_ready(mod2(x2, off2, msk2))
    ref2 = reference_modulated_deform_conv(x2, off2, msk2, mod2.weight,
                                           mod2.bias, 1, 2, 2, 2, 2)
    assert out2_v.shape == (N2, out2, Ho2, Wo2), out2_v.shape
    assert np.allclose(np.asarray(out2_v), np.asarray(ref2), **TOL)

    print("KERNEL_OK")
</pallas_src>

<mosaic_0001>
module attributes {stable_mosaic.version = 11 : i64} {
  func.func @_matmul_bias_kernel(%arg0: i32, %arg1: i32, %arg2: memref<1x512x36xbf16, #tpu.memory_space<vmem>>, %arg3: memref<1x36x4xbf16, #tpu.memory_space<vmem>>, %arg4: memref<1x1x4xf32, #tpu.memory_space<vmem>>, %arg5: memref<1x512x4xf32, #tpu.memory_space<vmem>>) attributes {dimension_semantics = [#tpu.dimension_semantics<parallel>, #tpu.dimension_semantics<parallel>], iteration_bounds = array<i64: 1, 1>, scalar_prefetch = 0 : i64, scratch_operands = 0 : i64, tpu.core_type = #tpu.core_type<tc>, window_params = [{transform_indices = @transform_0, window_bounds = array<i64: 1, 512, 36>}, {transform_indices = @transform_1, window_bounds = array<i64: 1, 36, 4>}, {transform_indices = @transform_2, window_bounds = array<i64: 1, 1, 4>}, {transform_indices = @transform_3, window_bounds = array<i64: 1, 512, 4>}]} {
    %c0 = arith.constant 0 : index
    %c0_0 = arith.constant 0 : index
    %c0_1 = arith.constant 0 : index
    %0 = vector.load %arg2[%c0, %c0_0, %c0_1] : memref<1x512x36xbf16, #tpu.memory_space<vmem>>, vector<1x512x36xbf16>
    %1 = vector.shape_cast %0 : vector<1x512x36xbf16> to vector<512x36xbf16>
    %c0_2 = arith.constant 0 : index
    %c0_3 = arith.constant 0 : index
    %c0_4 = arith.constant 0 : index
    %2 = vector.load %arg3[%c0_2, %c0_3, %c0_4] : memref<1x36x4xbf16, #tpu.memory_space<vmem>>, vector<1x36x4xbf16>
    %3 = vector.shape_cast %2 : vector<1x36x4xbf16> to vector<36x4xbf16>
    %cst = arith.constant dense<0.000000e+00> : vector<512x4xf32>
    %4 = tpu.matmul %1, %3, %cst {dimension_numbers = #tpu.dot_dimension_numbers<[1], [0], [0], [1], [0, 0, 1, 1], [], []>} : vector<512x36xbf16>, vector<36x4xbf16>, vector<512x4xf32> -> vector<512x4xf32>
    %c0_5 = arith.constant 0 : index
    %c0_6 = arith.constant 0 : index
    %c0_7 = arith.constant 0 : index
    %5 = vector.load %arg4[%c0_5, %c0_6, %c0_7] : memref<1x1x4xf32, #tpu.memory_space<vmem>>, vector<1x1x4xf32>
    %6 = vector.shape_cast %5 : vector<1x1x4xf32> to vector<1x4xf32>
    %7 = vector.broadcast %6 : vector<1x4xf32> to vector<512x4xf32>
    %8 = arith.addf %4, %7 : vector<512x4xf32>
    %c0_8 = arith.constant 0 : index
    %c0_9 = arith.constant 0 : index
    %c0_10 = arith.constant 0 : index
    %9 = vector.load %arg5[%c0_8, %c0_9, %c0_10] : memref<1x512x4xf32, #tpu.memory_space<vmem>>, vector<1x512x4xf32>
    %10 = vector.shape_cast %9 : vector<1x512x4xf32> to vector<512x4xf32>
    %11 = vector.shape_cast %8 : vector<512x4xf32> to vector<1x512x4xf32>
    tpu.vector_store %arg5[%c0_8, %c0_9, %c0_10], %11 {strides = array<i32>} : memref<1x512x4xf32, #tpu.memory_space<vmem>>, vector<1x512x4xf32>,
    return
  }
  func.func @transform_0(%arg0: i32, %arg1: i32) -> (i32, i32, i32) {
    %c0_i32 = arith.constant 0 : i32
    %c0_i32_0 = arith.constant 0 : i32
    return %arg0, %arg1, %c0_i32 : i32, i32, i32
  }
  func.func @transform_1(%arg0: i32, %arg1: i32) -> (i32, i32, i32) {
    %c0_i32 = arith.constant 0 : i32
    %c0_i32_0 = arith.constant 0 : i32
    %c0_i32_1 = arith.constant 0 : i32
    return %arg0, %c0_i32, %c0_i32_0 : i32, i32, i32
  }
  func.func @transform_2(%arg0: i32, %arg1: i32) -> (i32, i32, i32) {
    %c0_i32 = arith.constant 0 : i32
    %c0_i32_0 = arith.constant 0 : i32
    %c0_i32_1 = arith.constant 0 : i32
    return %arg0, %c0_i32, %c0_i32_0 : i32, i32, i32
  }
  func.func @transform_3(%arg0: i32, %arg1: i32) -> (i32, i32, i32) {
    %c0_i32 = arith.constant 0 : i32
    %c0_i32_0 = arith.constant 0 : i32
    return %arg0, %arg1, %c0_i32 : i32, i32, i32
  }
}

</mosaic_0001>

<bundles_post_ra>
// kernel: modulated_deform_conv.1
= control target key start
LH: loop header
LB: loop body
LE: loop exit
PB: predicated region body
PF: predicated region fallthrough
CT: control target
= control target key end

     0   :  { %vm360_vm0 = vcmask 1041408   ;;  %vm263_vm1 = vcmask 293888   ;;  %vm533_vm2 = vcmask 31744   ;;  %s1296_s1 = inlined_call_operand.vmem [shape: bf16[1,36,4], index: 1, kind: input, shape index: {}]   ;;  %s1297_s2 = inlined_call_operand.vmem [shape: f32[1,1,4], index: 2, kind: input, shape index: {}]   ;;  %s1298_s0 = inlined_call_operand.vmem [shape: bf16[1,512,36], index: 0, kind: input, shape index: {}]   ;;  %s1299_s3 = inlined_call_operand.vmem [shape: f32[1,512,4], index: 3, kind: output, shape index: {}]  }
   0x1   :  { %v83_v0 = vld [vmem:[%s1296_s1 + $0x10] sm:$0x3]  ;;  %v803_v4 = vld [vmem:[%s1296_s1 + $0x8] sm:$0xff]  ;;  %v802_v5 = vld [vmem:[%s1296_s1] sm:$0xff] }
   0x2   :  { %v257_v1 = vunpack.c.l.b16 %v83_v0  ;;  %v770_v6 = vld [vmem:[%s1298_s0] sm:$0xff]  ;;  %v771_v10 = vld [vmem:[%s1298_s0 + $0x8] sm:$0xff]  ;;  %v772_v14 = vld [vmem:[%s1298_s0 + $0x10] sm:$0xff] }
   0x3   :  { %v778_v7 = vld [vmem:[%s1298_s0 + $0x40] sm:$0xff]  ;;  %v779_v11 = vld [vmem:[%s1298_s0 + $0x48] sm:$0xff]  ;;  %v780_v15 = vld [vmem:[%s1298_s0 + $0x50] sm:$0xff] }
   0x4   :  { %v260_v2 = vpack.c.b16 %v257_v1, %v257_v1  ;;  %v786_v8 = vld [vmem:[%s1298_s0 + $0x80] sm:$0xff]  ;;  %v787_v12 = vld [vmem:[%s1298_s0 + $0x88] sm:$0xff]  ;;  %v788_v16 = vld [vmem:[%s1298_s0 + $0x90] sm:$0xff] }
   0x5   :  { %v794_v9 = vld [vmem:[%s1298_s0 + $0xc0] sm:$0xff]  ;;  %v795_v13 = vld [vmem:[%s1298_s0 + $0xc8] sm:$0xff]  ;;  %v796_v17 = vld [vmem:[%s1298_s0 + $0xd0] sm:$0xff] }
   0x6   :  { %v362_v3 = vsel %vm360_vm0, %v260_v2, 0  ;;  %v773_v18 = vld [vmem:[%s1298_s0 + $0x18] sm:$0xff]  ;;  %v774_v22 = vld [vmem:[%s1298_s0 + $0x20] sm:$0xff]  ;;  %v775_v26 = vld [vmem:[%s1298_s0 + $0x28] sm:$0xff] }
   0x7   :  { %369 = vmatpush.bf16.msra.mxu0 %v362_v3  ;;  %804 = vmatpush.bf16.msra.mxu1 %v362_v3  ;;  %v781_v19 = vld [vmem:[%s1298_s0 + $0x58] sm:$0xff]  ;;  %v782_v23 = vld [vmem:[%s1298_s0 + $0x60] sm:$0xff]  ;;  %v783_v27 = vld [vmem:[%s1298_s0 + $0x68] sm:$0xff] }
   0x8   :  { %805 = vmatpush.bf16.msra.mxu2 %v362_v3  ;;  %806 = vmatpush.bf16.msra.mxu3 %v362_v3  ;;  %v789_v20 = vld [vmem:[%s1298_s0 + $0x98] sm:$0xff]  ;;  %v790_v24 = vld [vmem:[%s1298_s0 + $0xa0] sm:$0xff]  ;;  %v791_v28 = vld [vmem:[%s1298_s0 + $0xa8] sm:$0xff] }
   0x9   :  { %v797_v21 = vld [vmem:[%s1298_s0 + $0xd8] sm:$0xff]  ;;  %v798_v25 = vld [vmem:[%s1298_s0 + $0xe0] sm:$0xff]  ;;  %v799_v29 = vld [vmem:[%s1298_s0 + $0xe8] sm:$0xff] }
   0xa   :  { %v776_v30 = vld [vmem:[%s1298_s0 + $0x30] sm:$0xff]  ;;  %v777_v34 = vld [vmem:[%s1298_s0 + $0x38] sm:$0xff]  ;;  %v974_v38 = vld [vmem:[%s1297_s2] ss:$0 sm:$0xff] }
   0xb   :  { %370 = vmatpush.bf16.msra.mxu0 %v803_v4  ;;  %807 = vmatpush.bf16.msra.mxu1 %v803_v4  ;;  %v784_v31 = vld [vmem:[%s1298_s0 + $0x70] sm:$0xff]  ;;  %v785_v35 = vld [vmem:[%s1298_s0 + $0x78] sm:$0xff] }
   0xc   :  { %808 = vmatpush.bf16.msra.mxu2 %v803_v4  ;;  %809 = vmatpush.bf16.msra.mxu3 %v803_v4  ;;  %v792_v32 = vld [vmem:[%s1298_s0 + $0xb0] sm:$0xff]  ;;  %v793_v36 = vld [vmem:[%s1298_s0 + $0xb8] sm:$0xff] }
   0xd   :  { %v800_v33 = vld [vmem:[%s1298_s0 + $0xf0] sm:$0xff]  ;;  %v801_v37 = vld [vmem:[%s1298_s0 + $0xf8] sm:$0xff] }
   0xf   :  { %371 = vmatpush.bf16.msra.mxu0 %v802_v5  ;;  %810 = vmatpush.bf16.msra.mxu1 %v802_v5 }
  0x10   :  { %811 = vmatpush.bf16.msra.mxu2 %v802_v5  ;;  %812 = vmatpush.bf16.msra.mxu3 %v802_v5 }
  0x12   :  { %738 = vmatmul.msk.bf16.vlgmr.msra.gmra.mxu0 %vm263_vm1, %v770_v6  ;;  %746 = vmatmul.msk.bf16.vlgmr.msra.gmra.mxu1 %vm263_vm1, %v778_v7 }
  0x13   :  { %754 = vmatmul.msk.bf16.vlgmr.msra.gmra.mxu2 %vm263_vm1, %v786_v8  ;;  %762 = vmatmul.msk.bf16.vlgmr.msra.gmra.mxu3 %vm263_vm1, %v794_v9 }
  0x22   :  { %739 = vmatmul.msk.bf16.gmra.mxu0 %vm263_vm1, %v771_v10  ;;  %747 = vmatmul.msk.bf16.gmra.mxu1 %vm263_vm1, %v779_v11 }
  0x23   :  { %755 = vmatmul.msk.bf16.gmra.mxu2 %vm263_vm1, %v787_v12  ;;  %763 = vmatmul.msk.bf16.gmra.mxu3 %vm263_vm1, %v795_v13 }
  0x32   :  { %740 = vmatmul.msk.bf16.gmra.mxu0 %vm263_vm1, %v772_v14  ;;  %748 = vmatmul.msk.bf16.gmra.mxu1 %vm263_vm1, %v780_v15 }
  0x33   :  { %756 = vmatmul.msk.bf16.gmra.mxu2 %vm263_vm1, %v788_v16  ;;  %764 = vmatmul.msk.bf16.gmra.mxu3 %vm263_vm1, %v796_v17 }
  0x42   :  { %741 = vmatmul.msk.bf16.gmra.mxu0 %vm263_vm1, %v773_v18  ;;  %749 = vmatmul.msk.bf16.gmra.mxu1 %vm263_vm1, %v781_v19 }
  0x43   :  { %757 = vmatmul.msk.bf16.gmra.mxu2 %vm263_vm1, %v789_v20  ;;  %765 = vmatmul.msk.bf16.gmra.mxu3 %vm263_vm1, %v797_v21 }
  0x52   :  { %742 = vmatmul.msk.bf16.gmra.mxu0 %vm263_vm1, %v774_v22  ;;  %750 = vmatmul.msk.bf16.gmra.mxu1 %vm263_vm1, %v782_v23 }
  0x53   :  { %758 = vmatmul.msk.bf16.gmra.mxu2 %vm263_vm1, %v790_v24  ;;  %766 = vmatmul.msk.bf16.gmra.mxu3 %vm263_vm1, %v798_v25 }
  0x62   :  { %743 = vmatmul.msk.bf16.gmra.mxu0 %vm263_vm1, %v775_v26  ;;  %751 = vmatmul.msk.bf16.gmra.mxu1 %vm263_vm1, %v783_v27 }
  0x63   :  { %759 = vmatmul.msk.bf16.gmra.mxu2 %vm263_vm1, %v791_v28  ;;  %767 = vmatmul.msk.bf16.gmra.mxu3 %vm263_vm1, %v799_v29 }
  0x72   :  { %744 = vmatmul.msk.bf16.gmra.mxu0 %vm263_vm1, %v776_v30  ;;  %752 = vmatmul.msk.bf16.gmra.mxu1 %vm263_vm1, %v784_v31 }
  0x73   :  { %760 = vmatmul.msk.bf16.gmra.mxu2 %vm263_vm1, %v792_v32  ;;  %768 = vmatmul.msk.bf16.gmra.mxu3 %vm263_vm1, %v800_v33 }
  0x82   :  { %745 = vmatmul.msk.bf16.gmra.mxu0 %vm263_vm1, %v777_v34  ;;  %753 = vmatmul.msk.bf16.gmra.mxu1 %vm263_vm1, %v785_v35 }
  0x83   :  { %761 = vmatmul.msk.bf16.gmra.mxu2 %vm263_vm1, %v793_v36  ;;  %769 = vmatmul.msk.bf16.gmra.mxu3 %vm263_vm1, %v801_v37 }
  0x8f   :  { %v373_v39 = vpop.f32.mrf.mxu0  ;;  %v413_v40 = vpop.f32.mrf.mxu1 }
  0x90   :  { %v374_v41 = vadd.f32 %v974_v38, %v373_v39  ;;  %v414_v42 = vadd.f32 %v974_v38, %v413_v40 }
  0x92   :  { %534 = vst.msk [vmem:[%s1299_s3] sm:$0xff] %vm533_vm2, %v374_v41 }
  0x93   :  { %550 = vst.msk [vmem:[%s1299_s3 + $0x80] sm:$0xff] %vm533_vm2, %v414_v42 }
  0x96   :  { %v453_v43 = vpop.f32.mrf.mxu2  ;;  %v493_v44 = vpop.f32.mrf.mxu3 }
  0x97   :  { %v454_v45 = vadd.f32 %v974_v38, %v453_v43  ;;  %v494_v46 = vadd.f32 %v974_v38, %v493_v44  ;;  %v375_v47 = vpop.f32.mrf.mxu0  ;;  %v415_v48 = vpop.f32.mrf.mxu1 }
  0x98   :  { %v376_v49 = vadd.f32 %v974_v38, %v375_v47  ;;  %v416_v50 = vadd.f32 %v974_v38, %v415_v48 }
  0x99   :  { %566 = vst.msk [vmem:[%s1299_s3 + $0x100] sm:$0xff] %vm533_vm2, %v454_v45 }
  0x9a   :  { %582 = vst.msk [vmem:[%s1299_s3 + $0x180] sm:$0xff] %vm533_vm2, %v494_v46 }
  0x9b   :  { %535 = vst.msk [vmem:[%s1299_s3 + $0x8] sm:$0xff] %vm533_vm2, %v376_v49 }
  0x9c   :  { %551 = vst.msk [vmem:[%s1299_s3 + $0x88] sm:$0xff] %vm533_vm2, %v416_v50 }
  0x9e   :  { %v455_v51 = vpop.f32.mrf.mxu2  ;;  %v495_v52 = vpop.f32.mrf.mxu3 }
  0x9f   :  { %v456_v53 = vadd.f32 %v974_v38, %v455_v51  ;;  %v496_v54 = vadd.f32 %v974_v38, %v495_v52  ;;  %v378_v55 = vpop.f32.mrf.mxu0  ;;  %v418_v56 = vpop.f32.mrf.mxu1 }
  0xa0   :  { %v379_v57 = vadd.f32 %v974_v38, %v378_v55  ;;  %v419_v58 = vadd.f32 %v974_v38, %v418_v56 }
  0xa1   :  { %567 = vst.msk [vmem:[%s1299_s3 + $0x108] sm:$0xff] %vm533_vm2, %v456_v53 }
  0xa2   :  { %583 = vst.msk [vmem:[%s1299_s3 + $0x188] sm:$0xff] %vm533_vm2, %v496_v54 }
  0xa3   :  { %536 = vst.msk [vmem:[%s1299_s3 + $0x10] sm:$0xff] %vm533_vm2, %v379_v57 }
  0xa4   :  { %552 = vst.msk [vmem:[%s1299_s3 + $0x90] sm:$0xff] %vm533_vm2, %v419_v58 }
  0xa6   :  { %v458_v59 = vpop.f32.mrf.mxu2  ;;  %v498_v60 = vpop.f32.mrf.mxu3 }
  0xa7   :  { %v459_v61 = vadd.f32 %v974_v38, %v458_v59  ;;  %v499_v62 = vadd.f32 %v974_v38, %v498_v60  ;;  %v380_v63 = vpop.f32.mrf.mxu0  ;;  %v420_v0 = vpop.f32.mrf.mxu1 }
  0xa8   :  { %v381_v1 = vadd.f32 %v974_v38, %v380_v63  ;;  %v421_v2 = vadd.f32 %v974_v38, %v420_v0 }
  0xa9   :  { %568 = vst.msk [vmem:[%s1299_s3 + $0x110] sm:$0xff] %vm533_vm2, %v459_v61 }
  0xaa   :  { %584 = vst.msk [vmem:[%s1299_s3 + $0x190] sm:$0xff] %vm533_vm2, %v499_v62 }
  0xab   :  { %537 = vst.msk [vmem:[%s1299_s3 + $0x18] sm:$0xff] %vm533_vm2, %v381_v1 }
  0xac   :  { %553 = vst.msk [vmem:[%s1299_s3 + $0x98] sm:$0xff] %vm533_vm2, %v421_v2 }
  0xae   :  { %v460_v3 = vpop.f32.mrf.mxu2  ;;  %v500_v4 = vpop.f32.mrf.mxu3 }
  0xaf   :  { %v461_v5 = vadd.f32 %v974_v38, %v460_v3  ;;  %v501_v6 = vadd.f32 %v974_v38, %v500_v4  ;;  %v383_v7 = vpop.f32.mrf.mxu0  ;;  %v423_v8 = vpop.f32.mrf.mxu1 }
  0xb0   :  { %v384_v9 = vadd.f32 %v974_v38, %v383_v7  ;;  %v424_v10 = vadd.f32 %v974_v38, %v423_v8 }
  0xb1   :  { %569 = vst.msk [vmem:[%s1299_s3 + $0x118] sm:$0xff] %vm533_vm2, %v461_v5 }
  0xb2   :  { %585 = vst.msk [vmem:[%s1299_s3 + $0x198] sm:$0xff] %vm533_vm2, %v501_v6 }
  0xb3   :  { %538 = vst.msk [vmem:[%s1299_s3 + $0x20] sm:$0xff] %vm533_vm2, %v384_v9 }
  0xb4   :  { %554 = vst.msk [vmem:[%s1299_s3 + $0xa0] sm:$0xff] %vm533_vm2, %v424_v10 }
  0xb6   :  { %v463_v11 = vpop.f32.mrf.mxu2  ;;  %v503_v12 = vpop.f32.mrf.mxu3 }
  0xb7   :  { %v464_v13 = vadd.f32 %v974_v38, %v463_v11  ;;  %v504_v14 = vadd.f32 %v974_v38, %v503_v12  ;;  %v385_v15 = vpop.f32.mrf.mxu0  ;;  %v425_v16 = vpop.f32.mrf.mxu1 }
  0xb8   :  { %v386_v17 = vadd.f32 %v974_v38, %v385_v15  ;;  %v426_v18 = vadd.f32 %v974_v38, %v425_v16 }
  0xb9   :  { %570 = vst.msk [vmem:[%s1299_s3 + $0x120] sm:$0xff] %vm533_vm2, %v464_v13 }
  0xba   :  { %586 = vst.msk [vmem:[%s1299_s3 + $0x1a0] sm:$0xff] %vm533_vm2, %v504_v14 }
  0xbb   :  { %539 = vst.msk [vmem:[%s1299_s3 + $0x28] sm:$0xff] %vm533_vm2, %v386_v17 }
  0xbc   :  { %555 = vst.msk [vmem:[%s1299_s3 + $0xa8] sm:$0xff] %vm533_vm2, %v426_v18 }
  0xbe   :  { %v465_v19 = vpop.f32.mrf.mxu2  ;;  %v505_v20 = vpop.f32.mrf.mxu3 }
  0xbf   :  { %v466_v21 = vadd.f32 %v974_v38, %v465_v19  ;;  %v506_v22 = vadd.f32 %v974_v38, %v505_v20  ;;  %v388_v23 = vpop.f32.mrf.mxu0  ;;  %v428_v24 = vpop.f32.mrf.mxu1 }
  0xc0   :  { %v389_v25 = vadd.f32 %v974_v38, %v388_v23  ;;  %v429_v26 = vadd.f32 %v974_v38, %v428_v24 }
  0xc1   :  { %571 = vst.msk [vmem:[%s1299_s3 + $0x128] sm:$0xff] %vm533_vm2, %v466_v21 }
  0xc2   :  { %587 = vst.msk [vmem:[%s1299_s3 + $0x1a8] sm:$0xff] %vm533_vm2, %v506_v22 }
  0xc3   :  { %540 = vst.msk [vmem:[%s1299_s3 + $0x30] sm:$0xff] %vm533_vm2, %v389_v25 }
  0xc4   :  { %556 = vst.msk [vmem:[%s1299_s3 + $0xb0] sm:$0xff] %vm533_vm2, %v429_v26 }
  0xc6   :  { %v468_v27 = vpop.f32.mrf.mxu2  ;;  %v508_v28 = vpop.f32.mrf.mxu3 }
  0xc7   :  { %v469_v29 = vadd.f32 %v974_v38, %v468_v27  ;;  %v509_v30 = vadd.f32 %v974_v38, %v508_v28  ;;  %v390_v31 = vpop.f32.mrf.mxu0  ;;  %v430_v32 = vpop.f32.mrf.mxu1 }
  0xc8   :  { %v391_v33 = vadd.f32 %v974_v38, %v390_v31  ;;  %v431_v34 = vadd.f32 %v974_v38, %v430_v32 }
  0xc9   :  { %572 = vst.msk [vmem:[%s1299_s3 + $0x130] sm:$0xff] %vm533_vm2, %v469_v29 }
  0xca   :  { %588 = vst.msk [vmem:[%s1299_s3 + $0x1b0] sm:$0xff] %vm533_vm2, %v509_v30 }
  0xcb   :  { %541 = vst.msk [vmem:[%s1299_s3 + $0x38] sm:$0xff] %vm533_vm2, %v391_v33 }
  0xcc   :  { %557 = vst.msk [vmem:[%s1299_s3 + $0xb8] sm:$0xff] %vm533_vm2, %v431_v34 }
  0xce   :  { %v470_v35 = vpop.f32.mrf.mxu2  ;;  %v510_v36 = vpop.f32.mrf.mxu3 }
  0xcf   :  { %v471_v37 = vadd.f32 %v974_v38, %v470_v35  ;;  %v511_v39 = vadd.f32 %v974_v38, %v510_v36  ;;  %v393_v40 = vpop.f32.mrf.mxu0  ;;  %v433_v41 = vpop.f32.mrf.mxu1 }
  0xd0   :  { %v394_v42 = vadd.f32 %v974_v38, %v393_v40  ;;  %v434_v43 = vadd.f32 %v974_v38, %v433_v41 }
  0xd1   :  { %573 = vst.msk [vmem:[%s1299_s3 + $0x138] sm:$0xff] %vm533_vm2, %v471_v37 }
  0xd2   :  { %589 = vst.msk [vmem:[%s1299_s3 + $0x1b8] sm:$0xff] %vm533_vm2, %v511_v39 }
  0xd3   :  { %542 = vst.msk [vmem:[%s1299_s3 + $0x40] sm:$0xff] %vm533_vm2, %v394_v42 }
  0xd4   :  { %558 = vst.msk [vmem:[%s1299_s3 + $0xc0] sm:$0xff] %vm533_vm2, %v434_v43 }
  0xd6   :  { %v473_v44 = vpop.f32.mrf.mxu2  ;;  %v513_v45 = vpop.f32.mrf.mxu3 }
  0xd7   :  { %v474_v46 = vadd.f32 %v974_v38, %v473_v44  ;;  %v514_v47 = vadd.f32 %v974_v38, %v513_v45  ;;  %v395_v48 = vpop.f32.mrf.mxu0  ;;  %v435_v49 = vpop.f32.mrf.mxu1 }
  0xd8   :  { %v396_v50 = vadd.f32 %v974_v38, %v395_v48  ;;  %v436_v51 = vadd.f32 %v974_v38, %v435_v49 }
  0xd9   :  { %574 = vst.msk [vmem:[%s1299_s3 + $0x140] sm:$0xff] %vm533_vm2, %v474_v46 }
  0xda   :  { %590 = vst.msk [vmem:[%s1299_s3 + $0x1c0] sm:$0xff] %vm533_vm2, %v514_v47 }
  0xdb   :  { %543 = vst.msk [vmem:[%s1299_s3 + $0x48] sm:$0xff] %vm533_vm2, %v396_v50 }
  0xdc   :  { %559 = vst.msk [vmem:[%s1299_s3 + $0xc8] sm:$0xff] %vm533_vm2, %v436_v51 }
  0xde   :  { %v475_v52 = vpop.f32.mrf.mxu2  ;;  %v515_v53 = vpop.f32.mrf.mxu3 }
  0xdf   :  { %v476_v54 = vadd.f32 %v974_v38, %v475_v52  ;;  %v516_v55 = vadd.f32 %v974_v38, %v515_v53  ;;  %v398_v56 = vpop.f32.mrf.mxu0  ;;  %v438_v57 = vpop.f32.mrf.mxu1 }
  0xe0   :  { %v399_v58 = vadd.f32 %v974_v38, %v398_v56  ;;  %v439_v59 = vadd.f32 %v974_v38, %v438_v57 }
  0xe1   :  { %575 = vst.msk [vmem:[%s1299_s3 + $0x148] sm:$0xff] %vm533_vm2, %v476_v54 }
  0xe2   :  { %591 = vst.msk [vmem:[%s1299_s3 + $0x1c8] sm:$0xff] %vm533_vm2, %v516_v55 }
  0xe3   :  { %544 = vst.msk [vmem:[%s1299_s3 + $0x50] sm:$0xff] %vm533_vm2, %v399_v58 }
  0xe4   :  { %560 = vst.msk [vmem:[%s1299_s3 + $0xd0] sm:$0xff] %vm533_vm2, %v439_v59 }
  0xe6   :  { %v478_v60 = vpop.f32.mrf.mxu2  ;;  %v518_v61 = vpop.f32.mrf.mxu3 }
  0xe7   :  { %v479_v62 = vadd.f32 %v974_v38, %v478_v60  ;;  %v519_v63 = vadd.f32 %v974_v38, %v518_v61  ;;  %v400_v0 = vpop.f32.mrf.mxu0  ;;  %v440_v1 = vpop.f32.mrf.mxu1 }
  0xe8   :  { %v401_v2 = vadd.f32 %v974_v38, %v400_v0  ;;  %v441_v3 = vadd.f32 %v974_v38, %v440_v1 }
  0xe9   :  { %576 = vst.msk [vmem:[%s1299_s3 + $0x150] sm:$0xff] %vm533_vm2, %v479_v62 }
  0xea   :  { %592 = vst.msk [vmem:[%s1299_s3 + $0x1d0] sm:$0xff] %vm533_vm2, %v519_v63 }
  0xeb   :  { %545 = vst.msk [vmem:[%s1299_s3 + $0x58] sm:$0xff] %vm533_vm2, %v401_v2 }
  0xec   :  { %561 = vst.msk [vmem:[%s1299_s3 + $0xd8] sm:$0xff] %vm533_vm2, %v441_v3 }
  0xee   :  { %v480_v4 = vpop.f32.mrf.mxu2  ;;  %v520_v5 = vpop.f32.mrf.mxu3 }
  0xef   :  { %v481_v6 = vadd.f32 %v974_v38, %v480_v4  ;;  %v521_v7 = vadd.f32 %v974_v38, %v520_v5  ;;  %v403_v8 = vpop.f32.mrf.mxu0  ;;  %v443_v9 = vpop.f32.mrf.mxu1 }
  0xf0   :  { %v404_v10 = vadd.f32 %v974_v38, %v403_v8  ;;  %v444_v11 = vadd.f32 %v974_v38, %v443_v9 }
  0xf1   :  { %577 = vst.msk [vmem:[%s1299_s3 + $0x158] sm:$0xff] %vm533_vm2, %v481_v6 }
  0xf2   :  { %593 = vst.msk [vmem:[%s1299_s3 + $0x1d8] sm:$0xff] %vm533_vm2, %v521_v7 }
  0xf3   :  { %546 = vst.msk [vmem:[%s1299_s3 + $0x60] sm:$0xff] %vm533_vm2, %v404_v10 }
  0xf4   :  { %562 = vst.msk [vmem:[%s1299_s3 + $0xe0] sm:$0xff] %vm533_vm2, %v444_v11 }
  0xf6   :  { %v483_v12 = vpop.f32.mrf.mxu2  ;;  %v523_v13 = vpop.f32.mrf.mxu3 }
  0xf7   :  { %v484_v14 = vadd.f32 %v974_v38, %v483_v12  ;;  %v524_v15 = vadd.f32 %v974_v38, %v523_v13  ;;  %v405_v16 = vpop.f32.mrf.mxu0  ;;  %v445_v17 = vpop.f32.mrf.mxu1 }
  0xf8   :  { %v406_v18 = vadd.f32 %v974_v38, %v405_v16  ;;  %v446_v19 = vadd.f32 %v974_v38, %v445_v17 }
  0xf9   :  { %578 = vst.msk [vmem:[%s1299_s3 + $0x160] sm:$0xff] %vm533_vm2, %v484_v14 }
  0xfa   :  { %594 = vst.msk [vmem:[%s1299_s3 + $0x1e0] sm:$0xff] %vm533_vm2, %v524_v15 }
  0xfb   :  { %547 = vst.msk [vmem:[%s1299_s3 + $0x68] sm:$0xff] %vm533_vm2, %v406_v18 }
  0xfc   :  { %563 = vst.msk [vmem:[%s1299_s3 + $0xe8] sm:$0xff] %vm533_vm2, %v446_v19 }
  0xfe   :  { %v485_v20 = vpop.f32.mrf.mxu2  ;;  %v525_v21 = vpop.f32.mrf.mxu3 }
  0xff   :  { %v486_v22 = vadd.f32 %v974_v38, %v485_v20  ;;  %v526_v23 = vadd.f32 %v974_v38, %v525_v21  ;;  %v408_v24 = vpop.f32.mrf.mxu0  ;;  %v448_v25 = vpop.f32.mrf.mxu1 }
 0x100   :  { %v409_v26 = vadd.f32 %v974_v38, %v408_v24  ;;  %v449_v27 = vadd.f32 %v974_v38, %v448_v25 }
 0x101   :  { %579 = vst.msk [vmem:[%s1299_s3 + $0x168] sm:$0xff] %vm533_vm2, %v486_v22 }
 0x102   :  { %595 = vst.msk [vmem:[%s1299_s3 + $0x1e8] sm:$0xff] %vm533_vm2, %v526_v23 }
 0x103   :  { %548 = vst.msk [vmem:[%s1299_s3 + $0x70] sm:$0xff] %vm533_vm2, %v409_v26 }
 0x104   :  { %564 = vst.msk [vmem:[%s1299_s3 + $0xf0] sm:$0xff] %vm533_vm2, %v449_v27 }
 0x106   :  { %v488_v28 = vpop.f32.mrf.mxu2  ;;  %v528_v29 = vpop.f32.mrf.mxu3 }
 0x107   :  { %v489_v30 = vadd.f32 %v974_v38, %v488_v28  ;;  %v529_v31 = vadd.f32 %v974_v38, %v528_v29  ;;  %v410_v32 = vpop.f32.mrf.mxu0  ;;  %v450_v33 = vpop.f32.mrf.mxu1 }
 0x108   :  { %v411_v34 = vadd.f32 %v974_v38, %v410_v32  ;;  %v451_v35 = vadd.f32 %v974_v38, %v450_v33 }
 0x109   :  { %580 = vst.msk [vmem:[%s1299_s3 + $0x170] sm:$0xff] %vm533_vm2, %v489_v30 }
 0x10a   :  { %596 = vst.msk [vmem:[%s1299_s3 + $0x1f0] sm:$0xff] %vm533_vm2, %v529_v31 }
 0x10b   :  { %549 = vst.msk [vmem:[%s1299_s3 + $0x78] sm:$0xff] %vm533_vm2, %v411_v34 }
 0x10c   :  { %565 = vst.msk [vmem:[%s1299_s3 + $0xf8] sm:$0xff] %vm533_vm2, %v451_v35 }
 0x10e   :  { %v490_v36 = vpop.f32.mrf.mxu2  ;;  %v530_v37 = vpop.f32.mrf.mxu3 }
 0x10f   :  { %v491_v39 = vadd.f32 %v974_v38, %v490_v36  ;;  %v531_v40 = vadd.f32 %v974_v38, %v530_v37 }
 0x111   :  { %581 = vst.msk [vmem:[%s1299_s3 + $0x178] sm:$0xff] %vm533_vm2, %v491_v39 }
 0x112   :  { %597 = vst.msk [vmem:[%s1299_s3 + $0x1f8] sm:$0xff] %vm533_vm2, %v531_v40 }

</bundles_post_ra>
